<compile_context>
chip_gen: v7x
topology: tpu7x:2x2x1
jax: 0.10.0
libtpu: 0.0.40
codegen_flags: <defaults>
</compile_context>

<pallas_src>
import functools

import jax
import jax.numpy as jnp
from jax.experimental import pallas as pl
from jax.experimental.pallas import tpu as pltpu

_LANES = 128
_SUBLANES = 8
_PAD_LOGIT = -1.0e4  # exp(-1e4) == 0.0 in f32  ->  BCE(x=-1e4, t=0) == 0.0 exactly


def _fused_bce_kernel(n_task_blocks, inv_task, inv_call,
                      x_ref, t_ref, task_ref, call_ref, acc_task, acc_call):
    i = pl.program_id(0)

    @pl.when(i == 0)
    def _():
        acc_task[...] = jnp.zeros_like(acc_task)
        acc_call[...] = jnp.zeros_like(acc_call)

    x = x_ref[...].astype(jnp.float32)   # required upcast on v5e; no-op here (already f32)
    t = t_ref[...].astype(jnp.float32)
    # Numerically stable BCE with logits (same as torch.nn.BCEWithLogitsLoss):
    #   max(x, 0) - x*t + log1p(exp(-|x|))
    loss = jnp.maximum(x, 0.0) - x * t + jnp.log1p(jnp.exp(-jnp.abs(x)))

    # Elementwise (VPU-only) accumulation per step; n_task_blocks is a Python
    # constant, so each branch is a cheap pl.when on the grid index.
    @pl.when(i < n_task_blocks)
    def _():
        acc_task[...] = acc_task[...] + loss

    @pl.when(i >= n_task_blocks)
    def _():
        acc_call[...] = acc_call[...] + loss

    # Single cross-lane/XLU reduction + mean fold, only on the last step.
    @pl.when(i == pl.num_programs(0) - 1)
    def _():
        task_ref[...] = jnp.sum(acc_task[...], keepdims=True) * inv_task
        call_ref[...] = jnp.sum(acc_call[...], keepdims=True) * inv_call


def _lane_pack(x, t, block_rows):
    """Flatten to f32, pad with zero-loss sentinels, reshape lane-dense (rows, 128)."""
    n = x.size
    rows = max(1, pl.cdiv(n, _LANES))
    rows_padded = pl.cdiv(rows, block_rows) * block_rows
    total = rows_padded * _LANES
    xf = jnp.ravel(x).astype(jnp.float32)
    tf = jnp.ravel(t).astype(jnp.float32)
    pad = total - n
    xf = jnp.pad(xf, (0, pad), constant_values=_PAD_LOGIT)
    tf = jnp.pad(tf, (0, pad), constant_values=0.0)
    return xf.reshape(rows_padded, _LANES), tf.reshape(rows_padded, _LANES)


@functools.partial(jax.jit, static_argnames=("max_block_rows",))
def double_loss(task_inputs, task_targets, call_inputs, call_targets,
                *, max_block_rows=512):
    """Pallas equivalent of DoubleLoss.forward: returns (task_loss, call_loss)."""
    assert task_inputs.shape == task_targets.shape
    assert call_inputs.shape == call_targets.shape

    n_task = task_inputs.size
    n_call = call_inputs.size

    r_task = max(1, pl.cdiv(n_task, _LANES))
    r_call = max(1, pl.cdiv(n_call, _LANES))
    # Block rows: multiple of 8 sublanes, no larger than needed, capped so that
    # 2 inputs x 2 pipeline buffers + 2 accumulators (~1.5 MiB at tm=512) stay
    # far below the 32 MiB scoped-VMEM default (safe for v7x's 64 MiB VMEM too).
    tm = min(max_block_rows, _SUBLANES * pl.cdiv(max(r_task, r_call), _SUBLANES))
    tm = max(tm, _SUBLANES)

    tx, tt = _lane_pack(task_inputs, task_targets, tm)
    cx, ct = _lane_pack(call_inputs, call_targets, tm)

    # Single fused slab -> one pallas_call for both losses.
    x_all = jnp.concatenate([tx, cx], axis=0)
    t_all = jnp.concatenate([tt, ct], axis=0)

    n_task_blocks = tx.shape[0] // tm
    n_blocks = x_all.shape[0] // tm

    kernel = functools.partial(
        _fused_bce_kernel,
        n_task_blocks,
        1.0 / float(n_task),
        1.0 / float(n_call),
    )

    # TODO(synk): for very large inputs on v7x, add a leading "parallel" grid
    # axis with per-core partial sums to use both TensorCores.
    task_out, call_out = pl.pallas_call(
        kernel,
        out_shape=(
            jax.ShapeDtypeStruct((1, 1), jnp.float32),
            jax.ShapeDtypeStruct((1, 1), jnp.float32),
        ),
        grid_spec=pltpu.PrefetchScalarGridSpec(
            num_scalar_prefetch=0,
            grid=(n_blocks,),
            in_specs=[
                pl.BlockSpec((tm, _LANES), lambda i: (i, 0)),
                pl.BlockSpec((tm, _LANES), lambda i: (i, 0)),
            ],
            out_specs=(
                pl.BlockSpec((1, 1), lambda i: (0, 0)),
                pl.BlockSpec((1, 1), lambda i: (0, 0)),
            ),
            scratch_shapes=[
                pltpu.VMEM((tm, _LANES), jnp.float32),
                pltpu.VMEM((tm, _LANES), jnp.float32),
            ],
        ),
        compiler_params=pltpu.CompilerParams(
            dimension_semantics=("arbitrary",),  # single reduction axis
        ),
    )(x_all, t_all)

    return task_out[0, 0], call_out[0, 0]


def _reference(task_inputs, task_targets, call_inputs, call_targets):
    def bce(x, t):
        x = x.astype(jnp.float32)
        t = t.astype(jnp.float32)
        return jnp.mean(jnp.maximum(x, 0.0) - x * t + jnp.log1p(jnp.exp(-jnp.abs(x))))
    return bce(task_inputs, task_targets), bce(call_inputs, call_targets)


if __name__ == "__main__":
    key = jax.random.PRNGKey(0)
    k1, k2, k3, k4 = jax.random.split(key, 4)

    # task head: (batch=16, task_classes=64); call head: (batch=16, call_classes=8)
    task_inputs = jax.random.normal(k1, (16, 64), dtype=jnp.float32)
    task_targets = (jax.random.uniform(k2, (16, 64)) > 0.5).astype(jnp.float32)
    call_inputs = jax.random.normal(k3, (16, 8), dtype=jnp.float32)
    call_targets = (jax.random.uniform(k4, (16, 8)) > 0.5).astype(jnp.float32)

    task_loss, call_loss = double_loss(task_inputs, task_targets, call_inputs, call_targets)
    jax.block_until_ready((task_loss, call_loss))

    ref_task, ref_call = _reference(task_inputs, task_targets, call_inputs, call_targets)
    assert jnp.allclose(task_loss, ref_task, rtol=1e-5, atol=1e-5), (task_loss, ref_task)
    assert jnp.allclose(call_loss, ref_call, rtol=1e-5, atol=1e-5), (call_loss, ref_call)

    print("KERNEL_OK")
</pallas_src>

<mosaic_0001>
module attributes {stable_mosaic.version = 11 : i64} {
  func.func @_fused_bce_kernel(%arg0: i32, %arg1: memref<8x128xf32, #tpu.memory_space<vmem>>, %arg2: memref<8x128xf32, #tpu.memory_space<vmem>>, %arg3: memref<1x1xf32, #tpu.memory_space<vmem>>, %arg4: memref<1x1xf32, #tpu.memory_space<vmem>>, %arg5: memref<8x128xf32, #tpu.memory_space<vmem>>, %arg6: memref<8x128xf32, #tpu.memory_space<vmem>>) attributes {dimension_semantics = [#tpu.dimension_semantics<arbitrary>], iteration_bounds = array<i64: 2>, scalar_prefetch = 0 : i64, scratch_operands = 2 : i64, tpu.core_type = #tpu.core_type<tc>, window_params = [{transform_indices = @transform_0, window_bounds = array<i64: 8, 128>}, {transform_indices = @transform_1, window_bounds = array<i64: 8, 128>}, {pipeline_mode = #tpu.pipeline_mode<synchronous>, transform_indices = @transform_2, window_bounds = array<i64: 1, 1>}, {pipeline_mode = #tpu.pipeline_mode<synchronous>, transform_indices = @transform_3, window_bounds = array<i64: 1, 1>}]} {
    %c0_i32 = arith.constant 0 : i32
    %0 = arith.cmpi eq, %arg0, %c0_i32 : i32
    %1 = arith.extui %0 : i1 to i32
    %c0_i32_0 = arith.constant 0 : i32
    %2 = arith.cmpi ne, %1, %c0_i32_0 : i32
    scf.if %2 {
      %cst_10 = arith.constant 0.000000e+00 : f32
      %24 = vector.broadcast %cst_10 : f32 to vector<8x128xf32>
      %c0_11 = arith.constant 0 : index
      %c0_12 = arith.constant 0 : index
      %25 = vector.load %arg5[%c0_11, %c0_12] : memref<8x128xf32, #tpu.memory_space<vmem>>, vector<8x128xf32>
      tpu.vector_store %arg5[%c0_11, %c0_12], %24 {strides = array<i32>} : memref<8x128xf32, #tpu.memory_space<vmem>>, vector<8x128xf32>,
      %cst_13 = arith.constant 0.000000e+00 : f32
      %26 = vector.broadcast %cst_13 : f32 to vector<8x128xf32>
      %c0_14 = arith.constant 0 : index
      %c0_15 = arith.constant 0 : index
      %27 = vector.load %arg6[%c0_14, %c0_15] : memref<8x128xf32, #tpu.memory_space<vmem>>, vector<8x128xf32>
      tpu.vector_store %arg6[%c0_14, %c0_15], %26 {strides = array<i32>} : memref<8x128xf32, #tpu.memory_space<vmem>>, vector<8x128xf32>,
    } else {
    }
    %c0 = arith.constant 0 : index
    %c0_1 = arith.constant 0 : index
    %3 = vector.load %arg1[%c0, %c0_1] : memref<8x128xf32, #tpu.memory_space<vmem>>, vector<8x128xf32>
    %c0_2 = arith.constant 0 : index
    %c0_3 = arith.constant 0 : index
    %4 = vector.load %arg2[%c0_2, %c0_3] : memref<8x128xf32, #tpu.memory_space<vmem>>, vector<8x128xf32>
    %cst = arith.constant 0.000000e+00 : f32
    %5 = vector.broadcast %cst : f32 to vector<8x128xf32>
    %6 = arith.maximumf %3, %5 : vector<8x128xf32>
    %7 = arith.mulf %3, %4 : vector<8x128xf32>
    %8 = arith.subf %6, %7 : vector<8x128xf32>
    %9 = math.absf %3 : vector<8x128xf32>
    %cst_4 = arith.constant 0.000000e+00 : f32
    %10 = vector.broadcast %cst_4 : f32 to vector<8x128xf32>
    %11 = arith.subf %10, %9 : vector<8x128xf32>
    %12 = math.exp %11 : vector<8x128xf32>
    %13 = math.log1p %12 : vector<8x128xf32>
    %14 = arith.addf %8, %13 : vector<8x128xf32>
    %c1_i32 = arith.constant 1 : i32
    %15 = arith.cmpi slt, %arg0, %c1_i32 : i32
    %16 = arith.extui %15 : i1 to i32
    %c0_i32_5 = arith.constant 0 : i32
    %17 = arith.cmpi ne, %16, %c0_i32_5 : i32
    scf.if %17 {
      %c0_10 = arith.constant 0 : index
      %c0_11 = arith.constant 0 : index
      %24 = vector.load %arg5[%c0_10, %c0_11] : memref<8x128xf32, #tpu.memory_space<vmem>>, vector<8x128xf32>
      %25 = arith.addf %24, %14 : vector<8x128xf32>
      %c0_12 = arith.constant 0 : index
      %c0_13 = arith.constant 0 : index
      %26 = vector.load %arg5[%c0_12, %c0_13] : memref<8x128xf32, #tpu.memory_space<vmem>>, vector<8x128xf32>
      tpu.vector_store %arg5[%c0_12, %c0_13], %25 {strides = array<i32>} : memref<8x128xf32, #tpu.memory_space<vmem>>, vector<8x128xf32>,
    } else {
    }
    %c1_i32_6 = arith.constant 1 : i32
    %18 = arith.cmpi sge, %arg0, %c1_i32_6 : i32
    %19 = arith.extui %18 : i1 to i32
    %c0_i32_7 = arith.constant 0 : i32
    %20 = arith.cmpi ne, %19, %c0_i32_7 : i32
    scf.if %20 {
      %c0_10 = arith.constant 0 : index
      %c0_11 = arith.constant 0 : index
      %24 = vector.load %arg6[%c0_10, %c0_11] : memref<8x128xf32, #tpu.memory_space<vmem>>, vector<8x128xf32>
      %25 = arith.addf %24, %14 : vector<8x128xf32>
      %c0_12 = arith.constant 0 : index
      %c0_13 = arith.constant 0 : index
      %26 = vector.load %arg6[%c0_12, %c0_13] : memref<8x128xf32, #tpu.memory_space<vmem>>, vector<8x128xf32>
      tpu.vector_store %arg6[%c0_12, %c0_13], %25 {strides = array<i32>} : memref<8x128xf32, #tpu.memory_space<vmem>>, vector<8x128xf32>,
    } else {
    }
    %c1_i32_8 = arith.constant 1 : i32
    %21 = arith.cmpi eq, %arg0, %c1_i32_8 : i32
    %22 = arith.extui %21 : i1 to i32
    %c0_i32_9 = arith.constant 0 : i32
    %23 = arith.cmpi ne, %22, %c0_i32_9 : i32
    scf.if %23 {
      %c0_10 = arith.constant 0 : index
      %c0_11 = arith.constant 0 : index
      %24 = vector.load %arg5[%c0_10, %c0_11] : memref<8x128xf32, #tpu.memory_space<vmem>>, vector<8x128xf32>
      %25 = vector.shape_cast %24 : vector<8x128xf32> to vector<1x8x128xf32>
      %cst_12 = arith.constant dense<0.000000e+00> : vector<1xf32>
      %26 = vector.multi_reduction <add>, %25, %cst_12 [1, 2] : vector<1x8x128xf32> to vector<1xf32>
      %27 = vector.shape_cast %26 : vector<1xf32> to vector<1x1x1xf32>
      %28 = vector.extract %27[0, 0, 0] : f32 from vector<1x1x1xf32>
      %29 = vector.broadcast %28 : f32 to vector<1x1xf32>
      %cst_13 = arith.constant 9.765625E-4 : f32
      %30 = vector.broadcast %cst_13 : f32 to vector<1x1xf32>
      %31 = arith.mulf %29, %30 : vector<1x1xf32>
      %c0_14 = arith.constant 0 : index
      %c0_15 = arith.constant 0 : index
      %32 = vector.load %arg3[%c0_14, %c0_15] : memref<1x1xf32, #tpu.memory_space<vmem>>, vector<1x1xf32>
      tpu.vector_store %arg3[%c0_14, %c0_15], %31 {strides = array<i32>} : memref<1x1xf32, #tpu.memory_space<vmem>>, vector<1x1xf32>,
      %c0_16 = arith.constant 0 : index
      %c0_17 = arith.constant 0 : index
      %33 = vector.load %arg6[%c0_16, %c0_17] : memref<8x128xf32, #tpu.memory_space<vmem>>, vector<8x128xf32>
      %34 = vector.shape_cast %33 : vector<8x128xf32> to vector<1x8x128xf32>
      %cst_18 = arith.constant dense<0.000000e+00> : vector<1xf32>
      %35 = vector.multi_reduction <add>, %34, %cst_18 [1, 2] : vector<1x8x128xf32> to vector<1xf32>
      %36 = vector.shape_cast %35 : vector<1xf32> to vector<1x1x1xf32>
      %37 = vector.extract %36[0, 0, 0] : f32 from vector<1x1x1xf32>
      %38 = vector.broadcast %37 : f32 to vector<1x1xf32>
      %cst_19 = arith.constant 7.812500e-03 : f32
      %39 = vector.broadcast %cst_19 : f32 to vector<1x1xf32>
      %40 = arith.mulf %38, %39 : vector<1x1xf32>
      %c0_20 = arith.constant 0 : index
      %c0_21 = arith.constant 0 : index
      %41 = vector.load %arg4[%c0_20, %c0_21] : memref<1x1xf32, #tpu.memory_space<vmem>>, vector<1x1xf32>
      tpu.vector_store %arg4[%c0_20, %c0_21], %40 {strides = array<i32>} : memref<1x1xf32, #tpu.memory_space<vmem>>, vector<1x1xf32>,
    } else {
    }
    return
  }
  func.func @transform_0(%arg0: i32) -> (i32, i32) {
    %c0_i32 = arith.constant 0 : i32
    %c0_i32_0 = arith.constant 0 : i32
    return %arg0, %c0_i32 : i32, i32
  }
  func.func @transform_1(%arg0: i32) -> (i32, i32) {
    %c0_i32 = arith.constant 0 : i32
    %c0_i32_0 = arith.constant 0 : i32
    return %arg0, %c0_i32 : i32, i32
  }
  func.func @transform_2(%arg0: i32) -> (i32, i32) {
    %c0_i32 = arith.constant 0 : i32
    %c0_i32_0 = arith.constant 0 : i32
    %c0_i32_1 = arith.constant 0 : i32
    return %c0_i32, %c0_i32_0 : i32, i32
  }
  func.func @transform_3(%arg0: i32) -> (i32, i32) {
    %c0_i32 = arith.constant 0 : i32
    %c0_i32_0 = arith.constant 0 : i32
    %c0_i32_1 = arith.constant 0 : i32
    return %c0_i32, %c0_i32_0 : i32, i32
  }
}

</mosaic_0001>

<bundles_post_ra>
// kernel: double_loss.1
= control target key start
LH: loop header
LB: loop body
LE: loop exit
PB: predicated region body
PF: predicated region fallthrough
CT: control target
= control target key end

     0   :  { %9 = vsyncpa [#allocation5], 0  ;;  %s531_s0 = inlined_call_operand.vmem [shape: f32[16,128], index: 0, kind: input, shape index: {}]   ;;  %s532_s1 = inlined_call_operand.vmem [shape: f32[16,128], index: 1, kind: input, shape index: {}]   ;;  %s533_s2 = inlined_call_operand.hbm [shape: f32[1,1], index: 2, kind: output, shape index: {0}]   ;;  %s534_s3 = inlined_call_operand.hbm [shape: f32[1,1], index: 3, kind: output, shape index: {1}]  }
   0x1   :  { %10 = vsyncpa [#allocation7], 0  ;;  %s458_s12 = smov 0  }
   0x2 LB: > { %s464_s13 = sadd.s32 4294967295, %s433_s12   ;;  %p323_p0 = scmp.ge.s32.totalorder %s433_s12, 1  ;;  %s433_s12 = sphi %s458_s12, %s16_s12  }
   0x3   : > { %p140_p1 = scmp.lt.s32.totalorder %s433_s12, 3 }
   0x5   : > { %p141_p2 = pnand %p323_p0, %p140_p1 }
   0x6   : > { %p162_p3 = scmp.lt.s32.totalorder (!%p141_p2), %s464_s13, 1  ;;  %p326_p4 = scmp.ne.s32.totalorder (!%p141_p2), %s464_s13, 0 }
   0x7   : > { %144 = sbr.rel (%p141_p2) target bundleno = 330 (0x14a), region = 28 }
   0xe   : > { %s163_s14 = scalar_select %p162_p3, %s464_s13, 1 }
   0xf   : > { %173 = sbr.rel (%p326_p4) target bundleno = 22 (0x16), region = 32  ;;  %v435_v0 = vmov (!%p326_p4), 0.0  }
  0x10   : > { %s324_s15 = sshll.u32 %s163_s14, 3  ;;  %174 = vst [vmem:[#allocation2] sm:$0xff] (!%p326_p4), %v435_v0  ;;  %175 = vst [vmem:[#allocation3] sm:$0xff] (!%p326_p4), %v435_v0 }
  0x11   : > { %s165_s18 = scalar_lea.vmem %s531_s0, %s324_s15  ;;  %s169_s21 = scalar_lea.vmem %s532_s1, %s324_s15 }
  0x16 PF: > { %v176_v1 = vld [vmem:[%s165_s18] sm:$0xff]  ;;  %p327_p5 = scmp.ge.s32.totalorder %s464_s13, 1 }
  0x17   : > { %v181_v2 = vand.u32 2147483647, %v176_v1  ;;  %v177_v8 = vld [vmem:[%s169_s21] sm:$0xff]  ;;  %v178_v10 = vmax.f32 %v176_v1, 0.0  ;;  %v199_v19 = vld [vmem:[#allocation2] sm:$0xff] (!%p327_p5) }
  0x18   : > { %v179_v11 = vmul.f32 %v177_v8, %v176_v1 }
  0x19   : > { %v182_v3 = vsub.f32 0.0, %v181_v2 }
  0x1a   : > { %v180_v15 = vsub.f32 %v178_v10, %v179_v11 }
  0x1b   : > { %v183_v4 = vmul.f32 1.442695, %v182_v3 }
  0x1d   : > { %363 = vpow2.f32 %v183_v4 }
  0x27   : > { %v364_v5 = vpop.eup %363 }
  0x28   : > { %v185_v6 = vadd.f32 1.0, %v364_v5  ;;  %v188_v7 = vmul.f32 -0.5, %v364_v5  ;;  %v191_v12 = vand.u32 2147483647, %v364_v5 }
  0x2a   : > { %365 = vlog2.f32 %v185_v6  ;;  %v189_v9 = vadd.f32 1.0, %v188_v7  ;;  %vm192_vm0 = vcmp.lt.f32.partialorder %v191_v12, 0.0004427343 }
  0x2c   : > { %v190_v13 = vmul.f32 %v364_v5, %v189_v9 }
  0x32   : > { %198 = sbr.rel (%p327_p5) target bundleno = 61 (0x3d), region = 36 }
  0x34   : > { %v366_v14 = vpop.eup %365 }
  0x35   : > { %v187_v16 = vmul.f32 0.6931472, %v366_v14 }
  0x37   : > { %v193_v17 = vsel %vm192_vm0, %v190_v13, %v187_v16 }
  0x38   : > { %v194_v18 = vadd.f32 %v193_v17, %v180_v15 }
  0x3a   : > { %v200_v20 = vadd.f32 %v199_v19, %v194_v18 }
  0x3c   : > { %201 = vst [vmem:[#allocation2] sm:$0xff] %v200_v20 }
  0x3d PF: > { %205 = sbr.rel (%p162_p3) target bundleno = 68 (0x44), region = 40  ;;  %v206_v21 = vld [vmem:[#allocation3] sm:$0xff] (!%p162_p3) }
  0x3e   : > { %v207_v22 = vadd.f32 (!%p162_p3), %v206_v21, %v194_v18 }
  0x40   : > { %208 = vst [vmem:[#allocation3] sm:$0xff] (!%p162_p3), %v207_v22 }
  0x44 PF: > { %p329_p6 = scmp.ne.s32.totalorder %s464_s13, 1 }
  0x45   : > { %v213_v23 = vld [vmem:[#allocation2] sm:$0xff] (!%p329_p6)  ;;  %vm225_vm1 = vcmask (!%p329_p6), 0  }
  0x46   : > { %212 = sbr.rel (%p329_p6) target bundleno = 282 (0x11a), region = 44  ;;  %214 = vadd.xlane.f32.xlu0 (!%p329_p6), %v213_v23 }
  0x47   : > { %v227_v24 = vld [vmem:[#allocation3] sm:$0xff] (!%p329_p6) }
  0x4a   : > { %228 = vadd.xlane.f32.xlu0 (!%p329_p6), %v227_v24 }
  0xd3   : > { %v215_v25 = vpop.xlane.xlu0 %214 }
  0xd4   : > { %v216_v26 = vrot.slane %v215_v25, 4 }
  0xd6   : > { %v217_v27 = vadd.f32 %v216_v26, %v215_v25 }
  0xd7   : > { %v229_v28 = vpop.xlane.xlu0 %228 }
  0xd8   : > { %v218_v29 = vrot.slane %v217_v27, 2  ;;  %v230_v30 = vrot.slane %v229_v28, 4 }
  0xda   : > { %v231_v31 = vadd.f32 %v230_v30, %v229_v28  ;;  %v219_v32 = vadd.f32 %v218_v29, %v217_v27 }
  0xdc   : > { %v232_v33 = vrot.slane %v231_v31, 2  ;;  %v220_v34 = vrot.slane %v219_v32, 1 }
  0xde   : > { %v233_v35 = vadd.f32 %v232_v33, %v231_v31  ;;  %v221_v36 = vadd.f32 %v220_v34, %v219_v32 }
  0xe0   : > { %336 = vpush %v221_v36  ;;  %v234_v37 = vrot.slane %v233_v35, 1 }
  0xe2   : > { %v235_v38 = vadd.f32 %v234_v37, %v233_v35 }
  0xe4   : > { %338 = vpush %v235_v38 }
 0x111   : > { %s337_s22 = spop %336 }
 0x112   : > { %v223_v39 = vstv %s337_s22 }
 0x113   : > { %v224_v40 = vmul.f32 0.0009765625, %v223_v39 }
 0x115   : > { %226 = vst.msk [vmem:[#allocation4] sm:$0x1] %vm225_vm1, %v224_v40  ;;  %s339_s23 = spop %338 }
 0x116   : > { %v237_v41 = vstv %s339_s23 }
 0x117   : > { %v238_v42 = vmul.f32 0.0078125, %v237_v41 }
 0x119   : > { %239 = vst.msk [vmem:[#allocation6] sm:$0x1] %vm225_vm1, %v238_v42 }
 0x11a PF: > { %p348_p7 = scmp.eq.s32.totalorder %s464_s13, 1  ;;  %s436_s24 = smov [#allocation4]  }
 0x11b   : > { %s247_s25 = sshll.u32 %s436_s24, 4  ;;  %s437_s26 = smov [#allocation6]   ;;  %s248_s25 = int_to_ptr.vmem [resolvable:$true] %s247_s25 }
 0x11c   : > { %s258_s27 = sshll.u32 %s437_s26, 4  ;;  %s367_s28 = scalar_lea.vmem %s248_s25, 16  ;;  %s259_s27 = int_to_ptr.vmem [resolvable:$true] %s258_s27 }
 0x11d   : > { %p368_p8 = scmp.ne.s32.totalorder %s248_s25, %s367_s28  ;;  %s373_s29 = scalar_lea.vmem %s248_s25, 32 }
 0x11e   : > { %p374_p11 = scmp.lt.s32.totalorder %s248_s25, %s248_s25  ;;  %p375_p12 = scmp.lt.s32.totalorder %s373_s29, %s367_s28 }
 0x11f   : > { %p369_p9 = pnand %p368_p8, %p348_p7 }
 0x120   : > { %p376_p13 = por %p375_p12, %p374_p11 }
 0x121   : > { %p370_p10 = pneg %p369_p9 }
 0x123   : > { %p377_p0 = pnand %p376_p13, %p370_p10 }
 0x125   : > { %380 = shalt.err (!%p377_p0)
}
 0x126   : > { %s381_s5 = scalar_lea.hbm %s533_s2, 16 }
 0x127   : > { %p382_p1 = scmp.ne.s32.totalorder %s533_s2, %s381_s5  ;;  %p387_p4 = scmp.lt.u32.totalorder %s381_s5, %s533_s2 }
 0x129   : > { %p383_p2 = pnand %p382_p1, %p348_p7 }
 0x12b   : > { %p384_p3 = pneg %p383_p2 }
 0x12d   : > { %p389_p5 = pnand %p387_p4, %p384_p3 }
 0x12f   : > { %392 = shalt.err (!%p389_p5)
}
 0x130   : > { %341 = dma.vmem_to_hbm [thread:$0]  (%p348_p7), %s248_s25, 16, %s533_s2, [#allocation5]  }
 0x131   : > { %s393_s14 = scalar_lea.vmem %s259_s27, 16  ;;  %s399_s15 = scalar_lea.vmem %s259_s27, 32 }
 0x132   : > { %p394_p6 = scmp.ne.s32.totalorder %s259_s27, %s393_s14  ;;  %p400_p10 = scmp.lt.s32.totalorder %s259_s27, %s259_s27 }
 0x133   : > { %p401_p11 = scmp.lt.s32.totalorder %s399_s15, %s393_s14 }
 0x134   : > { %p395_p8 = pnand %p394_p6, %p348_p7 }
 0x135   : > { %p402_p12 = por %p401_p11, %p400_p10 }
 0x136   : > { %p396_p9 = pneg %p395_p8 }
 0x138   : > { %p403_p13 = pnand %p402_p12, %p396_p9 }
 0x13a   : > { %406 = shalt.err (!%p403_p13)
}
 0x13b   : > { %s407_s18 = scalar_lea.hbm %s534_s3, 16 }
 0x13c   : > { %p408_p0 = scmp.ne.s32.totalorder %s534_s3, %s407_s18  ;;  %p413_p3 = scmp.lt.u32.totalorder %s407_s18, %s534_s3 }
 0x13e   : > { %p409_p1 = pnand %p408_p0, %p348_p7 }
 0x140   : > { %p410_p2 = pneg %p409_p1 }
 0x142   : > { %p415_p4 = pnand %p413_p3, %p410_p2 }
 0x144   : > { %418 = shalt.err (!%p415_p4)
}
 0x145   : > { %343 = dma.vmem_to_hbm [thread:$0]  (%p348_p7), %s259_s27, 16, %s534_s3, [#allocation7]  }
 0x146   : > { %424 = dma.done.wait (%p348_p7), [#allocation5], 16  }
 0x147   : > { %426 = vsyncadd (%p348_p7), [#allocation5], 4294967280 }
 0x148   : > { %428 = dma.done.wait (%p348_p7), [#allocation7], 16  }
 0x149   : > { %430 = vsyncadd (%p348_p7), [#allocation7], 4294967280 }
 0x14a PF: > { %s16_s12 = sadd.s32 1, %s433_s12  }
 0x14b   : > { %p13_p5 = scmp.ge.s32.totalorder %s16_s12, 4  }
 0x14d   :  { %15 = sbr.rel (!%p13_p5) target bundleno = 2 (0x2), region = 82 }
 0x154   :  { %275 = vsyncpa [#allocation5], 1 }
 0x155   :  { %277 = vsyncpa [#allocation5 + $0x1], 1 }
 0x156   :  { %278 = vsyncpa [#allocation7], 1 }

</bundles_post_ra>
